<compile_context>
chip_gen: v6e
topology: v6e:2x2x1
jax: 0.10.0
libtpu: 0.0.40
codegen_flags: <defaults>
</compile_context>

<pallas_src>
import jax
import jax.numpy as jnp
from jax.experimental import pallas as pl
from jax.experimental.pallas import tpu as pltpu


def _round_up(x, m):
    return ((x + m - 1) // m) * m


def _patch_embed_kernel(x_ref, w_ref, b_ref, o_ref):
    # x_ref: (TILE_M, K_pad)   patches-as-rows (f32 or bf16)
    # w_ref: (K_pad, N_pad)    flattened conv weight (VMEM-resident across grid)
    # b_ref: (1, N_pad)        bias, f32
    # o_ref: (TILE_M, N_pad)
    acc = jnp.dot(x_ref[...], w_ref[...], preferred_element_type=jnp.float32)
    o_ref[...] = (acc + b_ref[...]).astype(o_ref.dtype)


def patch_embed(x, weight, bias, patch_size, *, compute_dtype=None, tile_m=512):
    """PatchEmbed forward.

    x:      [B, C, H, W]            (NCHW, like PyTorch)
    weight: [embed_dim, C, P, P]    (PyTorch Conv2d weight layout)
    bias:   [embed_dim]
    compute_dtype: e.g. jnp.bfloat16 on v6e/v7x (f32 accumulation either way)
    returns [B, num_patches, embed_dim]
    """
    B, C, H, W = x.shape
    P = patch_size
    assert H % P == 0 and W % P == 0
    gh, gw = H // P, W // P
    num_patches = gh * gw
    embed_dim = weight.shape[0]
    out_dtype = x.dtype

    # --- glue: patchify (reshape/transpose only, no compute) ---
    # [B, C, gh, P, gw, P] -> [B, gh, gw, C, P, P] -> [B*num_patches, C*P*P]
    # TODO(synk): this transpose is a full extra HBM pass; accept NHWC or
    # pre-patchified input upstream (and reorder w2d rows to match) to drop it.
    xp = x.reshape(B, C, gh, P, gw, P)
    xp = jnp.transpose(xp, (0, 2, 4, 1, 3, 5))
    xp = xp.reshape(B * num_patches, C * P * P)

    # Flatten conv weight to a projection matrix [K, N]; bias stays f32.
    w2d = weight.reshape(embed_dim, C * P * P).T
    b2d = bias.astype(jnp.float32).reshape(1, embed_dim)

    M = B * num_patches
    K = C * P * P
    N = embed_dim

    # Lane-dense padding: K, N up to multiples of 128 (zero pad — exact math).
    K_pad = _round_up(K, 128)
    N_pad = _round_up(N, 128)
    if K_pad != K:
        xp = jnp.pad(xp, ((0, 0), (0, K_pad - K)))
        w2d = jnp.pad(w2d, ((0, K_pad - K), (0, 0)))
    if N_pad != N:
        w2d = jnp.pad(w2d, ((0, 0), (0, N_pad - N)))
        b2d = jnp.pad(b2d, ((0, 0), (0, N_pad - N)))

    if compute_dtype is not None:
        xp = xp.astype(compute_dtype)
        w2d = w2d.astype(compute_dtype)

    # Tile M; keep the (small) weight and bias fully resident; no K split.
    tm = M if M <= tile_m else tile_m
    grid_m = pl.cdiv(M, tm)

    in_itemsize = jnp.dtype(xp.dtype).itemsize
    out_itemsize = jnp.dtype(out_dtype).itemsize
    cost = pl.CostEstimate(
        flops=2 * M * K_pad * N_pad,
        transcendentals=0,
        bytes_accessed=(M * K_pad + K_pad * N_pad) * in_itemsize
        + M * N_pad * out_itemsize,
    )

    out = pl.pallas_call(
        _patch_embed_kernel,
        out_shape=jax.ShapeDtypeStruct((M, N_pad), out_dtype),
        grid_spec=pltpu.PrefetchScalarGridSpec(
            num_scalar_prefetch=0,
            grid=(grid_m,),
            in_specs=[
                pl.BlockSpec((tm, K_pad), lambda i: (i, 0)),      # streamed over M
                pl.BlockSpec((K_pad, N_pad), lambda i: (0, 0)),   # VMEM-resident
                pl.BlockSpec((1, N_pad), lambda i: (0, 0)),       # VMEM-resident
            ],
            out_specs=pl.BlockSpec((tm, N_pad), lambda i: (i, 0)),
        ),
        compiler_params=pltpu.CompilerParams(
            dimension_semantics=("parallel",)),
        cost_estimate=cost,
    )(xp, w2d, b2d)

    # Drop the zero-padded embed columns; norm_layer=None -> nn.Identity().
    out = out[:, :N]
    return out.reshape(B, num_patches, embed_dim)


if __name__ == "__main__":
    # Small shapes consistent with the module: img_size=16, patch_size=4,
    # in_c=4, embed_dim=32  ->  num_patches = (16/4)^2 = 16.
    B, C, H, W = 2, 4, 16, 16
    P = 4
    embed_dim = 32

    key = jax.random.PRNGKey(0)
    kx, kw, kb = jax.random.split(key, 3)
    x = jax.random.normal(kx, (B, C, H, W), dtype=jnp.float32)
    weight = jax.random.normal(kw, (embed_dim, C, P, P), dtype=jnp.float32) * 0.02
    bias = jax.random.normal(kb, (embed_dim,), dtype=jnp.float32) * 0.02

    # f32 path (strict check).
    out = jax.block_until_ready(patch_embed(x, weight, bias, P))
    assert out.shape == (B, (H // P) * (W // P), embed_dim), out.shape

    # Reference: plain-JAX conv (same semantics as nn.Conv2d with
    # kernel=stride=patch_size, then flatten(2).transpose(1, 2)).
    ref = jax.lax.conv_general_dilated(
        x, weight, window_strides=(P, P), padding="VALID",
        dimension_numbers=("NCHW", "OIHW", "NCHW"))
    ref = ref + bias.reshape(1, embed_dim, 1, 1)
    ref = ref.reshape(B, embed_dim, -1).transpose(0, 2, 1)
    assert jnp.allclose(out, ref, atol=1e-4, rtol=1e-4)

    # bf16 compute path (what you would run on v6e/v7x); looser tolerance.
    out_bf16 = jax.block_until_ready(
        patch_embed(x, weight, bias, P, compute_dtype=jnp.bfloat16))
    assert out_bf16.shape == out.shape
    assert jnp.allclose(out_bf16, ref, atol=2e-2, rtol=2e-2)

    print("KERNEL_OK")
</pallas_src>

<mosaic_0001>
module attributes {stable_mosaic.version = 11 : i64} {
  func.func @_patch_embed_kernel(%arg0: i32, %arg1: memref<32x128xf32, #tpu.memory_space<vmem>>, %arg2: memref<128x128xf32, #tpu.memory_space<vmem>>, %arg3: memref<1x128xf32, #tpu.memory_space<vmem>>, %arg4: memref<32x128xf32, #tpu.memory_space<vmem>>) attributes {dimension_semantics = [#tpu.dimension_semantics<parallel>], iteration_bounds = array<i64: 1>, scalar_prefetch = 0 : i64, scratch_operands = 0 : i64, tpu.core_type = #tpu.core_type<tc>, window_params = [{transform_indices = @transform_0, window_bounds = array<i64: 32, 128>}, {pipeline_mode = #tpu.pipeline_mode<synchronous>, transform_indices = @transform_1, window_bounds = array<i64: 128, 128>}, {pipeline_mode = #tpu.pipeline_mode<synchronous>, transform_indices = @transform_2, window_bounds = array<i64: 1, 128>}, {transform_indices = @transform_3, window_bounds = array<i64: 32, 128>}]} {
    %c0 = arith.constant 0 : index
    %c0_0 = arith.constant 0 : index
    %0 = vector.load %arg1[%c0, %c0_0] : memref<32x128xf32, #tpu.memory_space<vmem>>, vector<32x128xf32>
    %c0_1 = arith.constant 0 : index
    %c0_2 = arith.constant 0 : index
    %1 = vector.load %arg2[%c0_1, %c0_2] : memref<128x128xf32, #tpu.memory_space<vmem>>, vector<128x128xf32>
    %cst = arith.constant dense<0.000000e+00> : vector<32x128xf32>
    %2 = tpu.matmul %0, %1, %cst {dimension_numbers = #tpu.dot_dimension_numbers<[1], [0], [0], [1], [0, 0, 1, 1], [], []>} : vector<32x128xf32>, vector<128x128xf32>, vector<32x128xf32> -> vector<32x128xf32>
    %c0_3 = arith.constant 0 : index
    %c0_4 = arith.constant 0 : index
    %3 = vector.load %arg3[%c0_3, %c0_4] : memref<1x128xf32, #tpu.memory_space<vmem>>, vector<1x128xf32>
    %4 = vector.broadcast %3 : vector<1x128xf32> to vector<32x128xf32>
    %5 = arith.addf %2, %4 : vector<32x128xf32>
    %c0_5 = arith.constant 0 : index
    %c0_6 = arith.constant 0 : index
    %6 = vector.load %arg4[%c0_5, %c0_6] : memref<32x128xf32, #tpu.memory_space<vmem>>, vector<32x128xf32>
    tpu.vector_store %arg4[%c0_5, %c0_6], %5 {strides = array<i32>} : memref<32x128xf32, #tpu.memory_space<vmem>>, vector<32x128xf32>,
    return
  }
  func.func @transform_0(%arg0: i32) -> (i32, i32) {
    %c0_i32 = arith.constant 0 : i32
    %c0_i32_0 = arith.constant 0 : i32
    return %arg0, %c0_i32 : i32, i32
  }
  func.func @transform_1(%arg0: i32) -> (i32, i32) {
    %c0_i32 = arith.constant 0 : i32
    %c0_i32_0 = arith.constant 0 : i32
    %c0_i32_1 = arith.constant 0 : i32
    return %c0_i32, %c0_i32_0 : i32, i32
  }
  func.func @transform_2(%arg0: i32) -> (i32, i32) {
    %c0_i32 = arith.constant 0 : i32
    %c0_i32_0 = arith.constant 0 : i32
    %c0_i32_1 = arith.constant 0 : i32
    return %c0_i32, %c0_i32_0 : i32, i32
  }
  func.func @transform_3(%arg0: i32) -> (i32, i32) {
    %c0_i32 = arith.constant 0 : i32
    %c0_i32_0 = arith.constant 0 : i32
    return %arg0, %c0_i32 : i32, i32
  }
}

</mosaic_0001>

<bundles_post_ra>
// kernel: tpu_custom_call.1
= control target key start
LH: loop header
LB: loop body
LE: loop exit
PB: predicated region body
PF: predicated region fallthrough
CT: control target
= control target key end

     0   :  { %8 = vsyncpa [#allocation3], 0  ;;  %s385_s0 = inlined_call_operand.hbm [shape: f32[32,128], index: 0, kind: input, shape index: {}]   ;;  %s386_s1 = inlined_call_operand.hbm [shape: f32[128,128], index: 1, kind: input, shape index: {}]   ;;  %s387_s2 = inlined_call_operand.vmem [shape: f32[1,128], index: 2, kind: input, shape index: {}]   ;;  %s388_s3 = inlined_call_operand.hbm [shape: f32[32,128], index: 3, kind: output, shape index: {}]  }
   0x1   :  { %9 = vsyncpa [#allocation6], 0 }
   0x2   :  { %10 = vsyncpa [#allocation4], 0  ;;  %s339_s12 = smov [#allocation2]  }
   0x3   :  { %s16_s13 = sshll.u32 %s339_s12, 4  ;;  %s17_s13 = int_to_ptr.vmem [resolvable:$true] %s16_s13 }
   0x4   :  { %s281_s14 = scalar_lea.vmem %s17_s13, 512  ;;  %p286_p1 = scmp.lt.s32.totalorder %s17_s13, %s17_s13 }
   0x5   :  { %p282_p0 = scmp.ne.s32.totalorder %s17_s13, %s281_s14  ;;  %p287_p2 = scmp.lt.s32.totalorder %s281_s14, %s281_s14 }
   0x7   :  { %p288_p3 = por %p287_p2, %p286_p1 }
   0x9   :  { %p289_p4 = pnand %p288_p3, %p282_p0 }
   0xb   :  { %292 = shalt.err (!%p289_p4)
}
   0xc   :  { %s340_s15 = smov 128   ;;  %s341_s16 = smov 8  }
   0xd   :  { %22 = dma.hbm_to_vmem [thread:$0]  %s385_s0, 512, %s17_s13, [#allocation3], %s340_s15, %s340_s15, %s341_s16  }
   0xe   :  { %s342_s19 = smov [#allocation5]  }
   0xf   :  { %s28_s20 = sshll.u32 %s342_s19, 4  ;;  %s29_s20 = int_to_ptr.vmem [resolvable:$true] %s28_s20 }
  0x10   :  { %s301_s21 = scalar_lea.vmem %s29_s20, 2048  ;;  %p306_p6 = scmp.lt.s32.totalorder %s29_s20, %s29_s20 }
  0x11   :  { %p302_p5 = scmp.ne.s32.totalorder %s29_s20, %s301_s21  ;;  %p307_p7 = scmp.lt.s32.totalorder %s301_s21, %s301_s21 }
  0x13   :  { %p308_p8 = por %p307_p7, %p306_p6 }
  0x15   :  { %p309_p9 = pnand %p308_p8, %p302_p5 }
  0x17   :  { %312 = shalt.err (!%p309_p9)
}
  0x18   :  { %34 = dma.hbm_to_vmem [thread:$0]  %s386_s1, 2048, %s29_s20, [#allocation6], %s340_s15, %s340_s15, %s341_s16  }
  0x19   :  { %333 = dma.done.wait [#allocation3], 512  }
  0x1a   :  { %334 = vsyncadd [#allocation3], 4294966784 }
  0x1b   :  { %335 = dma.done.wait [#allocation6], 2048  }
  0x1c   :  { %336 = vsyncadd [#allocation6], 4294965248  ;;  %v62_v0 = vld [vmem:[#allocation5 + $0x78] sm:$0xff]  ;;  %v61_v1 = vld [vmem:[#allocation5 + $0x70] sm:$0xff]  ;;  %s343_s24 = smov [#allocation7]  }
  0x1d   :  { %198 = vmatprep.subr.mxu0 %v62_v0  ;;  %236 = vmatprep.subr.mxu1 %v62_v0  ;;  %v60_v2 = vld [vmem:[#allocation5 + $0x68] sm:$0xff]  ;;  %v59_v3 = vld [vmem:[#allocation5 + $0x60] sm:$0xff]  ;;  %v58_v4 = vld [vmem:[#allocation5 + $0x58] sm:$0xff]  ;;  %s164_s25 = sshll.u32 %s343_s24, 4  ;;  %s165_s25 = int_to_ptr.vmem [resolvable:$true] %s164_s25 }
  0x1e   :  { %199 = vmatpush3.msra.mxu0 %v62_v0  ;;  %252 = vmatpush3.msra.mxu1 %v62_v0  ;;  %v57_v5 = vld [vmem:[#allocation5 + $0x50] sm:$0xff]  ;;  %v56_v6 = vld [vmem:[#allocation5 + $0x48] sm:$0xff]  ;;  %v55_v7 = vld [vmem:[#allocation5 + $0x40] sm:$0xff]  ;;  %s313_s26 = scalar_lea.vmem %s165_s25, 512  ;;  %p318_p11 = scmp.lt.s32.totalorder %s165_s25, %s165_s25 }
  0x1f   :  { %200 = vmatprep.subr.mxu0 %v61_v1  ;;  %237 = vmatprep.subr.mxu1 %v61_v1  ;;  %v54_v8 = vld [vmem:[#allocation5 + $0x38] sm:$0xff]  ;;  %v53_v9 = vld [vmem:[#allocation5 + $0x30] sm:$0xff]  ;;  %v52_v10 = vld [vmem:[#allocation5 + $0x28] sm:$0xff]  ;;  %p314_p10 = scmp.ne.s32.totalorder %s165_s25, %s313_s26  ;;  %p319_p12 = scmp.lt.s32.totalorder %s313_s26, %s313_s26 }
  0x20   :  { %201 = vmatpush3.msra.mxu0 %v61_v1  ;;  %253 = vmatpush3.msra.mxu1 %v61_v1  ;;  %v51_v11 = vld [vmem:[#allocation5 + $0x20] sm:$0xff]  ;;  %v50_v12 = vld [vmem:[#allocation5 + $0x18] sm:$0xff]  ;;  %v49_v13 = vld [vmem:[#allocation5 + $0x10] sm:$0xff] }
  0x21   :  { %202 = vmatprep.subr.mxu0 %v60_v2  ;;  %238 = vmatprep.subr.mxu1 %v60_v2  ;;  %v48_v14 = vld [vmem:[#allocation5 + $0x8] sm:$0xff]  ;;  %v47_v15 = vld [vmem:[#allocation5] sm:$0xff]  ;;  %v45_v17 = vld [vmem:[#allocation2 + $0x10] sm:$0xff]  ;;  %p320_p13 = por %p319_p12, %p318_p11 }
  0x22   :  { %203 = vmatpush3.msra.mxu0 %v60_v2  ;;  %254 = vmatpush3.msra.mxu1 %v60_v2  ;;  %v43_v16 = vld [vmem:[#allocation2] sm:$0xff]  ;;  %v44_v18 = vld [vmem:[#allocation2 + $0x8] sm:$0xff]  ;;  %v46_v19 = vld [vmem:[#allocation2 + $0x18] sm:$0xff] }
  0x23   :  { %204 = vmatprep.subr.mxu0 %v59_v3  ;;  %239 = vmatprep.subr.mxu1 %v59_v3  ;;  %v177_v20 = vld [vmem:[%s387_s2] ss:$0 sm:$0xff]  ;;  %p321_p0 = pnand %p320_p13, %p314_p10 }
  0x24   :  { %205 = vmatpush3.msra.mxu0 %v59_v3  ;;  %255 = vmatpush3.msra.mxu1 %v59_v3 }
  0x25   :  { %206 = vmatprep.subr.mxu0 %v58_v4  ;;  %240 = vmatprep.subr.mxu1 %v58_v4 }
  0x26   :  { %207 = vmatpush3.msra.mxu0 %v58_v4  ;;  %256 = vmatpush3.msra.mxu1 %v58_v4 }
  0x27   :  { %208 = vmatprep.subr.mxu0 %v57_v5  ;;  %241 = vmatprep.subr.mxu1 %v57_v5 }
  0x28   :  { %209 = vmatpush3.msra.mxu0 %v57_v5  ;;  %257 = vmatpush3.msra.mxu1 %v57_v5 }
  0x29   :  { %210 = vmatprep.subr.mxu0 %v56_v6  ;;  %242 = vmatprep.subr.mxu1 %v56_v6 }
  0x2a   :  { %211 = vmatpush3.msra.mxu0 %v56_v6  ;;  %258 = vmatpush3.msra.mxu1 %v56_v6 }
  0x2b   :  { %212 = vmatprep.subr.mxu0 %v55_v7  ;;  %243 = vmatprep.subr.mxu1 %v55_v7 }
  0x2c   :  { %213 = vmatpush3.msra.mxu0 %v55_v7  ;;  %259 = vmatpush3.msra.mxu1 %v55_v7 }
  0x2d   :  { %214 = vmatprep.subr.mxu0 %v54_v8  ;;  %244 = vmatprep.subr.mxu1 %v54_v8 }
  0x2e   :  { %215 = vmatpush3.msra.mxu0 %v54_v8  ;;  %260 = vmatpush3.msra.mxu1 %v54_v8 }
  0x2f   :  { %216 = vmatprep.subr.mxu0 %v53_v9  ;;  %245 = vmatprep.subr.mxu1 %v53_v9 }
  0x30   :  { %217 = vmatpush3.msra.mxu0 %v53_v9  ;;  %261 = vmatpush3.msra.mxu1 %v53_v9 }
  0x31   :  { %218 = vmatprep.subr.mxu0 %v52_v10  ;;  %246 = vmatprep.subr.mxu1 %v52_v10 }
  0x32   :  { %219 = vmatpush3.msra.mxu0 %v52_v10  ;;  %262 = vmatpush3.msra.mxu1 %v52_v10 }
  0x33   :  { %220 = vmatprep.subr.mxu0 %v51_v11  ;;  %247 = vmatprep.subr.mxu1 %v51_v11 }
  0x34   :  { %221 = vmatpush3.msra.mxu0 %v51_v11  ;;  %263 = vmatpush3.msra.mxu1 %v51_v11 }
  0x35   :  { %222 = vmatprep.subr.mxu0 %v50_v12  ;;  %248 = vmatprep.subr.mxu1 %v50_v12 }
  0x36   :  { %223 = vmatpush3.msra.mxu0 %v50_v12  ;;  %264 = vmatpush3.msra.mxu1 %v50_v12 }
  0x37   :  { %224 = vmatprep.subr.mxu0 %v49_v13  ;;  %249 = vmatprep.subr.mxu1 %v49_v13 }
  0x38   :  { %225 = vmatpush3.msra.mxu0 %v49_v13  ;;  %265 = vmatpush3.msra.mxu1 %v49_v13 }
  0x39   :  { %226 = vmatprep.subr.mxu0 %v48_v14  ;;  %250 = vmatprep.subr.mxu1 %v48_v14 }
  0x3a   :  { %227 = vmatpush3.msra.mxu0 %v48_v14  ;;  %266 = vmatpush3.msra.mxu1 %v48_v14 }
  0x3b   :  { %228 = vmatprep.subr.mxu0 %v47_v15  ;;  %251 = vmatprep.subr.mxu1 %v47_v15 }
  0x3c   :  { %229 = vmatpush3.msra.mxu0 %v47_v15  ;;  %267 = vmatpush3.msra.mxu1 %v47_v15 }
  0x3d   :  { %230 = vmatprep.mubr.f32.mxu0 %v43_v16  ;;  %233 = vmatprep.mubr.f32.mxu1 %v45_v17 }
  0x3e   :  { %231 = vmatmul.mubr.f32.vlgmr.msra.gmra.mxu0 %v44_v18  ;;  %234 = vmatmul.mubr.f32.vlgmr.msra.gmra.mxu1 %v46_v19 }
  0xfe   :  { %v232_v21 = vpop.f32.mrf.mxu0  ;;  %v235_v22 = vpop.f32.mrf.mxu1 }
  0xff   :  { %v142_v23 = vadd.f32 %v232_v21, %v177_v20  ;;  %v152_v24 = vadd.f32 %v235_v22, %v177_v20 }
 0x100   :  { %v136_v25 = vpop.f32.mrf.mxu0  ;;  %v146_v26 = vpop.f32.mrf.mxu1 }
 0x101   :  { %156 = vst [vmem:[#allocation7 + $0x8] sm:$0xff] %v142_v23  ;;  %158 = vst [vmem:[#allocation7 + $0x18] sm:$0xff] %v152_v24  ;;  %v137_v27 = vadd.f32 %v177_v20, %v136_v25  ;;  %v147_v28 = vadd.f32 %v177_v20, %v146_v26 }
 0x103   :  { %155 = vst [vmem:[#allocation7] sm:$0xff] %v137_v27  ;;  %157 = vst [vmem:[#allocation7 + $0x10] sm:$0xff] %v147_v28 }
 0x104   :  { %324 = shalt.err (!%p321_p0)
}
 0x105   :  { %170 = dma.vmem_to_hbm [thread:$0]  %s165_s25, 512, %s388_s3, [#allocation4], %s340_s15, %s340_s15, %s341_s16  }
 0x106   :  { %337 = dma.done.wait [#allocation4], 512  }
 0x107   :  { %338 = vsyncadd [#allocation4], 4294966784 }
 0x108   :  { %174 = vsyncpa [#allocation3], 1 }
 0x109   :  { %175 = vsyncpa [#allocation6], 1 }
 0x10a   :  { %176 = vsyncpa [#allocation4], 1 }

</bundles_post_ra>
